<compile_context>
chip_gen: v7x
topology: tpu7x:2x2x1
jax: 0.10.0
libtpu: 0.0.40
codegen_flags: <defaults>
</compile_context>

<pallas_src>
import jax
import jax.numpy as jnp
from jax.experimental import pallas as pl
from jax.experimental.pallas import tpu as pltpu

block_size = 10
n_embd = 24
n_hidden = 150
vocab_size = 27        # stand-in for len(itos) from cities.csv
VOCAB_PAD = 128        # lane-dense logits width (last dim multiple of 128)
_NEG_INF = -1e30
_MAX_TB = 2048         # max batch tile (footprint ~few MiB, safe on all chips)


def _round_up(x, m):
    return (x + m - 1) // m * m


def _make_kernel(compute_loss):
    P, V = block_size, vocab_size

    def kernel(x_ref, sel_ref, vcol_ref, wfused_ref, b1_ref, w2_ref, b2_ref, *rest):
        if compute_loss:
            logits_ref, nll_ref = rest
        else:
            (logits_ref,) = rest
        tb = x_ref.shape[0]

        # ---- fused Embedding + Flatten + Linear1 ----
        # idx_rep[b, p*V + v] = idx[b, p]   (tiny selector matmul on the MXU)
        idx = x_ref[:, :P]                                             # (TB, P) int32
        idx_rep = jnp.dot(idx.astype(jnp.float32).astype(jnp.bfloat16), sel_ref[...],
                          preferred_element_type=jnp.float32)          # (TB, P*V) exact ints
        onehot = (idx_rep == vcol_ref[...]).astype(jnp.bfloat16)       # single compare + cast
        h = jnp.dot(onehot, wfused_ref[...],
                    preferred_element_type=jnp.float32) + b1_ref[...]  # (TB, 150) f32

        # ---- Linear(150 -> vocab_pad) ----
        logits = jnp.dot(h.astype(jnp.bfloat16), w2_ref[...],
                         preferred_element_type=jnp.float32) + b2_ref[...]
        logits_ref[...] = logits.astype(logits_ref.dtype)              # bf16 writeback

        if compute_loss:
            # Cross-entropy epilogue in f32; padded vocab lanes masked to -inf,
            # padded batch rows (target == -1) masked to zero; per-tile sum out.
            tgt = x_ref[:, P:P + 1]                                    # (TB, 1) int32
            col = jax.lax.broadcasted_iota(jnp.int32, (tb, VOCAB_PAD), 1)
            masked = jnp.where(col < V, logits, _NEG_INF)
            m = jnp.max(masked, axis=-1, keepdims=True)
            lse = m + jnp.log(jnp.sum(jnp.exp(masked - m), axis=-1, keepdims=True))
            picked = jnp.sum(jnp.where(col == tgt, masked, 0.0), axis=-1, keepdims=True)
            nll = jnp.where(tgt >= 0, lse - picked, 0.0)               # (TB, 1)
            part = jnp.sum(nll, axis=0, keepdims=True)                 # (1, 1) partial sum
            nll_ref[...] = jnp.broadcast_to(part, nll_ref.shape)       # lane-dense (8,128)

    return kernel


def _final_mlp_pallas(x_idx, prepared, targets):
    """x_idx: (B, block_size) int32; targets: (B,) int32 or None."""
    B = x_idx.shape[0]
    P = block_size
    compute_loss = targets is not None

    # Batch tile: 2048 for big batches; otherwise aim for >=2 blocks so v7x's
    # second TensorCore is used. TB always a multiple of 8 (sublane rule).
    if B >= 2 * _MAX_TB:
        TB = _MAX_TB
    else:
        TB = max(8, _round_up(pl.cdiv(B, 2), 8))
    B_pad = _round_up(B, TB)
    nb = B_pad // TB

    # Targets ride as an extra int32 column of x (one row stream instead of two);
    # padded rows get target = -1 so the kernel masks them out of the loss.
    if compute_loss:
        x_in = jnp.zeros((B_pad, P + 1), jnp.int32)
        x_in = x_in.at[:, P].set(-1)
        x_in = x_in.at[:B, :P].set(x_idx.astype(jnp.int32))
        x_in = x_in.at[:B, P].set(targets.astype(jnp.int32))
        ncols = P + 1
    else:
        x_in = jnp.zeros((B_pad, P), jnp.int32).at[:B].set(x_idx.astype(jnp.int32))
        ncols = P

    rowblock = lambda i: (i, 0)
    resident = lambda i: (0, 0)        # weights stay VMEM-resident across the grid

    in_specs = [
        pl.BlockSpec((TB, ncols), rowblock),
        pl.BlockSpec(prepared["sel"].shape, resident),
        pl.BlockSpec(prepared["vcol"].shape, resident),
        pl.BlockSpec(prepared["wfused"].shape, resident),
        pl.BlockSpec(prepared["b1"].shape, resident),
        pl.BlockSpec(prepared["w2_t"].shape, resident),
        pl.BlockSpec(prepared["b2"].shape, resident),
    ]
    inputs = [x_in, prepared["sel"], prepared["vcol"], prepared["wfused"],
              prepared["b1"], prepared["w2_t"], prepared["b2"]]

    out_shape = [jax.ShapeDtypeStruct((B_pad, VOCAB_PAD), jnp.bfloat16)]  # bf16 logits
    out_specs = [pl.BlockSpec((TB, VOCAB_PAD), rowblock)]
    if compute_loss:
        # per-tile NLL partial sums, lane/sublane aligned (8,128) blocks
        out_shape.append(jax.ShapeDtypeStruct((nb * 8, 128), jnp.float32))
        out_specs.append(pl.BlockSpec((8, 128), rowblock))

    outs = pl.pallas_call(
        _make_kernel(compute_loss),
        out_shape=tuple(out_shape),
        grid_spec=pltpu.PrefetchScalarGridSpec(
            num_scalar_prefetch=0,
            grid=(nb,),
            in_specs=in_specs,
            out_specs=tuple(out_specs),
        ),
        compiler_params=pltpu.CompilerParams(
            dimension_semantics=("parallel",),      # shard batch across v7x's 2 TCs
            vmem_limit_bytes=32 * 1024 * 1024,      # plenty; footprint is a few MiB
        ),
    )(*inputs)

    if compute_loss:
        logits_pad, nll_part = outs
        loss = jnp.sum(nll_part[0::8, 0]) / B
    else:
        (logits_pad,) = outs
        loss = None
    logits = logits_pad[:B, :vocab_size].astype(jnp.float32)
    return logits, loss


def init_params(key):
    """Raw parameters in PyTorch layout (Embedding + two Linear(out, in))."""
    k_emb, k_w1, k_b1, k_w2, k_b2 = jax.random.split(key, 5)
    emb = jax.random.normal(k_emb, (vocab_size, n_embd), jnp.float32)
    fan_in1 = n_embd * block_size
    bnd1 = 1.0 / jnp.sqrt(fan_in1)
    w1 = jax.random.uniform(k_w1, (n_hidden, fan_in1), jnp.float32, -bnd1, bnd1)
    b1 = jax.random.uniform(k_b1, (n_hidden,), jnp.float32, -bnd1, bnd1)
    bnd2 = 1.0 / jnp.sqrt(n_hidden)
    w2 = jax.random.uniform(k_w2, (vocab_size, n_hidden), jnp.float32, -bnd2, bnd2)
    b2 = jax.random.uniform(k_b2, (vocab_size,), jnp.float32, -bnd2, bnd2)
    w2 = w2 * 0.1  # mimic `self.net[-1].weight *= 0.1`
    return emb, w1, b1, w2, b2


def prepare_params(raw):
    """One-time layout prep (fold / transpose / pad / cast) — forward does none."""
    emb, w1, b1, w2, b2 = raw
    P, V = block_size, vocab_size
    eye_p = jnp.eye(P, dtype=jnp.float32)
    # Fold Embedding + Flatten + Linear1: W_fused = kron(I_P, emb) @ W1.T  (270, 150)
    wfused = jnp.kron(eye_p, emb) @ jnp.transpose(w1)
    # Selector that repeats each position's index V times: (P, P*V), 0/1 blocks.
    sel = jnp.kron(eye_p, jnp.ones((1, V), jnp.float32))
    # Per-column vocab id (0..V-1 repeated per position), for the one-hot compare.
    vcol = jnp.tile(jnp.arange(V, dtype=jnp.float32), (P,)).reshape(1, P * V)
    w2_t = jnp.zeros((n_hidden, VOCAB_PAD), jnp.float32).at[:, :V].set(jnp.transpose(w2))
    b2_row = jnp.zeros((1, VOCAB_PAD), jnp.float32).at[:, :V].set(b2)
    return {
        "sel": sel.astype(jnp.bfloat16),
        "vcol": vcol,                          # f32 (exact small ints)
        "wfused": wfused.astype(jnp.bfloat16),
        "b1": b1.reshape(1, n_hidden),         # f32 bias (epilogue stays f32)
        "w2_t": w2_t.astype(jnp.bfloat16),
        "b2": b2_row,                          # f32 bias, zero-padded lanes
    }


def final_mlp_forward(prepared, x, targets=None):
    """x: (B, block_size) int indices; targets: (B,) int or None."""
    return _final_mlp_pallas(x, prepared, targets)


# TODO(synk): generate()/infer() autoregressive sampling (torch.multinomial loop)
# is host-side control flow and is not implemented as a kernel.

if __name__ == "__main__":
    key = jax.random.PRNGKey(0)
    k_params, kx, kt = jax.random.split(key, 3)
    raw = init_params(k_params)
    prepared = prepare_params(raw)

    B = 8
    x = jax.random.randint(kx, (B, block_size), 0, vocab_size, dtype=jnp.int32)
    targets = jax.random.randint(kt, (B,), 0, vocab_size, dtype=jnp.int32)

    logits, loss = final_mlp_forward(prepared, x, targets)
    logits = jax.block_until_ready(logits)
    loss = jax.block_until_ready(loss)

    # Inference path (no targets) exercises the loss-free kernel variant.
    logits_inf, loss_inf = final_mlp_forward(prepared, x, None)
    logits_inf = jax.block_until_ready(logits_inf)

    # Pure-JAX reference mirroring the kernel's folded bf16-matmul / f32-acc math.
    emb, w1, b1, w2, b2 = raw
    wfused_ref = jnp.kron(jnp.eye(block_size, dtype=jnp.float32), emb) @ w1.T
    onehot_ref = (x[:, :, None] == jnp.arange(vocab_size)[None, None, :]).reshape(
        B, block_size * vocab_size)
    h_ref = jnp.dot(onehot_ref.astype(jnp.bfloat16), wfused_ref.astype(jnp.bfloat16),
                    preferred_element_type=jnp.float32) + b1
    ref_logits = jnp.dot(h_ref.astype(jnp.bfloat16), w2.T.astype(jnp.bfloat16),
                         preferred_element_type=jnp.float32) + b2
    ref_lse = jax.scipy.special.logsumexp(ref_logits, axis=-1)
    ref_loss = jnp.mean(ref_lse - ref_logits[jnp.arange(B), targets])

    assert logits.shape == (B, vocab_size)
    assert logits_inf.shape == (B, vocab_size) and loss_inf is None
    assert jnp.allclose(logits, ref_logits, atol=1e-2, rtol=1e-2)
    assert jnp.allclose(logits, logits_inf, atol=1e-5, rtol=1e-5)
    assert jnp.allclose(loss, ref_loss, atol=1e-2, rtol=1e-2)

    print("KERNEL_OK")
</pallas_src>

<mosaic_0001>
module attributes {stable_mosaic.version = 11 : i64} {
  func.func @kernel(%arg0: i32, %arg1: memref<8x11xi32, #tpu.memory_space<vmem>>, %arg2: memref<10x270xbf16, #tpu.memory_space<vmem>>, %arg3: memref<1x270xf32, #tpu.memory_space<vmem>>, %arg4: memref<270x150xbf16, #tpu.memory_space<vmem>>, %arg5: memref<1x150xf32, #tpu.memory_space<vmem>>, %arg6: memref<150x128xbf16, #tpu.memory_space<vmem>>, %arg7: memref<1x128xf32, #tpu.memory_space<vmem>>, %arg8: memref<8x128xbf16, #tpu.memory_space<vmem>>, %arg9: memref<8x128xf32, #tpu.memory_space<vmem>>) attributes {dimension_semantics = [#tpu.dimension_semantics<parallel>], iteration_bounds = array<i64: 1>, scalar_prefetch = 0 : i64, scratch_operands = 0 : i64, tpu.core_type = #tpu.core_type<tc>, window_params = [{transform_indices = @transform_0, window_bounds = array<i64: 8, 11>}, {pipeline_mode = #tpu.pipeline_mode<synchronous>, transform_indices = @transform_1, window_bounds = array<i64: 10, 270>}, {pipeline_mode = #tpu.pipeline_mode<synchronous>, transform_indices = @transform_2, window_bounds = array<i64: 1, 270>}, {pipeline_mode = #tpu.pipeline_mode<synchronous>, transform_indices = @transform_3, window_bounds = array<i64: 270, 150>}, {pipeline_mode = #tpu.pipeline_mode<synchronous>, transform_indices = @transform_4, window_bounds = array<i64: 1, 150>}, {pipeline_mode = #tpu.pipeline_mode<synchronous>, transform_indices = @transform_5, window_bounds = array<i64: 150, 128>}, {pipeline_mode = #tpu.pipeline_mode<synchronous>, transform_indices = @transform_6, window_bounds = array<i64: 1, 128>}, {transform_indices = @transform_7, window_bounds = array<i64: 8, 128>}, {transform_indices = @transform_8, window_bounds = array<i64: 8, 128>}]} {
    %c0 = arith.constant 0 : index
    %c0_0 = arith.constant 0 : index
    %0 = vector.load %arg1[%c0, %c0_0] : memref<8x11xi32, #tpu.memory_space<vmem>>, vector<8x10xi32>
    %1 = arith.sitofp %0 : vector<8x10xi32> to vector<8x10xf32>
    %2 = arith.truncf %1 : vector<8x10xf32> to vector<8x10xbf16>
    %c0_1 = arith.constant 0 : index
    %c0_2 = arith.constant 0 : index
    %3 = vector.load %arg2[%c0_1, %c0_2] : memref<10x270xbf16, #tpu.memory_space<vmem>>, vector<10x270xbf16>
    %cst = arith.constant dense<0.000000e+00> : vector<8x270xf32>
    %4 = tpu.matmul %2, %3, %cst {dimension_numbers = #tpu.dot_dimension_numbers<[1], [0], [0], [1], [0, 0, 1, 1], [], []>} : vector<8x10xbf16>, vector<10x270xbf16>, vector<8x270xf32> -> vector<8x270xf32>
    %c0_3 = arith.constant 0 : index
    %c0_4 = arith.constant 0 : index
    %5 = vector.load %arg3[%c0_3, %c0_4] : memref<1x270xf32, #tpu.memory_space<vmem>>, vector<1x270xf32>
    %6 = vector.broadcast %5 : vector<1x270xf32> to vector<8x270xf32>
    %7 = arith.cmpf oeq, %4, %6 : vector<8x270xf32>
    %8 = arith.extui %7 : vector<8x270xi1> to vector<8x270xi32>
    %9 = arith.sitofp %8 : vector<8x270xi32> to vector<8x270xf32>
    %10 = arith.truncf %9 : vector<8x270xf32> to vector<8x270xbf16>
    %c0_5 = arith.constant 0 : index
    %c0_6 = arith.constant 0 : index
    %11 = vector.load %arg4[%c0_5, %c0_6] : memref<270x150xbf16, #tpu.memory_space<vmem>>, vector<270x150xbf16>
    %cst_7 = arith.constant dense<0.000000e+00> : vector<8x150xf32>
    %12 = tpu.matmul %10, %11, %cst_7 {dimension_numbers = #tpu.dot_dimension_numbers<[1], [0], [0], [1], [0, 0, 1, 1], [], []>} : vector<8x270xbf16>, vector<270x150xbf16>, vector<8x150xf32> -> vector<8x150xf32>
    %c0_8 = arith.constant 0 : index
    %c0_9 = arith.constant 0 : index
    %13 = vector.load %arg5[%c0_8, %c0_9] : memref<1x150xf32, #tpu.memory_space<vmem>>, vector<1x150xf32>
    %14 = vector.broadcast %13 : vector<1x150xf32> to vector<8x150xf32>
    %15 = arith.addf %12, %14 : vector<8x150xf32>
    %16 = arith.truncf %15 : vector<8x150xf32> to vector<8x150xbf16>
    %c0_10 = arith.constant 0 : index
    %c0_11 = arith.constant 0 : index
    %17 = vector.load %arg6[%c0_10, %c0_11] : memref<150x128xbf16, #tpu.memory_space<vmem>>, vector<150x128xbf16>
    %cst_12 = arith.constant dense<0.000000e+00> : vector<8x128xf32>
    %18 = tpu.matmul %16, %17, %cst_12 {dimension_numbers = #tpu.dot_dimension_numbers<[1], [0], [0], [1], [0, 0, 1, 1], [], []>} : vector<8x150xbf16>, vector<150x128xbf16>, vector<8x128xf32> -> vector<8x128xf32>
    %c0_13 = arith.constant 0 : index
    %c0_14 = arith.constant 0 : index
    %19 = vector.load %arg7[%c0_13, %c0_14] : memref<1x128xf32, #tpu.memory_space<vmem>>, vector<1x128xf32>
    %20 = vector.broadcast %19 : vector<1x128xf32> to vector<8x128xf32>
    %21 = arith.addf %18, %20 : vector<8x128xf32>
    %22 = arith.truncf %21 : vector<8x128xf32> to vector<8x128xbf16>
    %c0_15 = arith.constant 0 : index
    %c0_16 = arith.constant 0 : index
    %23 = vector.load %arg8[%c0_15, %c0_16] : memref<8x128xbf16, #tpu.memory_space<vmem>>, vector<8x128xbf16>
    tpu.vector_store %arg8[%c0_15, %c0_16], %22 {strides = array<i32>} : memref<8x128xbf16, #tpu.memory_space<vmem>>, vector<8x128xbf16>,
    %c0_17 = arith.constant 0 : index
    %c10 = arith.constant 10 : index
    %24 = vector.load %arg1[%c0_17, %c10] : memref<8x11xi32, #tpu.memory_space<vmem>>, vector<8x1xi32>
    %25 = tpu.iota {dimensions = array<i32: 1>} : vector<8x128xi32>
    %c27_i32 = arith.constant 27 : i32
    %26 = vector.broadcast %c27_i32 : i32 to vector<8x128xi32>
    %27 = arith.cmpi slt, %25, %26 : vector<8x128xi32>
    %cst_18 = arith.constant -1.000000e+30 : f32
    %28 = vector.broadcast %cst_18 : f32 to vector<8x128xf32>
    %29 = arith.select %27, %21, %28 : vector<8x128xi1>, vector<8x128xf32>
    %cst_19 = arith.constant dense<0xFF800000> : vector<8xf32>
    %30 = vector.multi_reduction <maximumf>, %29, %cst_19 [1] : vector<8x128xf32> to vector<8xf32>
    %31 = vector.shape_cast %30 : vector<8xf32> to vector<8x1xf32>
    %32 = vector.broadcast %31 : vector<8x1xf32> to vector<8x128xf32>
    %33 = arith.subf %29, %32 : vector<8x128xf32>
    %34 = math.exp %33 : vector<8x128xf32>
    %cst_20 = arith.constant dense<0.000000e+00> : vector<8xf32>
    %35 = vector.multi_reduction <add>, %34, %cst_20 [1] : vector<8x128xf32> to vector<8xf32>
    %36 = vector.shape_cast %35 : vector<8xf32> to vector<8x1xf32>
    %37 = math.log %36 : vector<8x1xf32>
    %38 = arith.addf %31, %37 : vector<8x1xf32>
    %39 = vector.broadcast %24 : vector<8x1xi32> to vector<8x128xi32>
    %40 = arith.cmpi eq, %25, %39 : vector<8x128xi32>
    %cst_21 = arith.constant 0.000000e+00 : f32
    %41 = vector.broadcast %cst_21 : f32 to vector<8x128xf32>
    %42 = arith.select %40, %29, %41 : vector<8x128xi1>, vector<8x128xf32>
    %cst_22 = arith.constant dense<0.000000e+00> : vector<8xf32>
    %43 = vector.multi_reduction <add>, %42, %cst_22 [1] : vector<8x128xf32> to vector<8xf32>
    %44 = vector.shape_cast %43 : vector<8xf32> to vector<8x1xf32>
    %c0_i32 = arith.constant 0 : i32
    %45 = vector.broadcast %c0_i32 : i32 to vector<8x1xi32>
    %46 = arith.cmpi sge, %24, %45 : vector<8x1xi32>
    %47 = arith.subf %38, %44 : vector<8x1xf32>
    %cst_23 = arith.constant 0.000000e+00 : f32
    %48 = vector.broadcast %cst_23 : f32 to vector<8x1xf32>
    %49 = arith.select %46, %47, %48 : vector<8x1xi1>, vector<8x1xf32>
    %cst_24 = arith.constant dense<0.000000e+00> : vector<1xf32>
    %50 = vector.multi_reduction <add>, %49, %cst_24 [0] : vector<8x1xf32> to vector<1xf32>
    %51 = vector.shape_cast %50 : vector<1xf32> to vector<1x1xf32>
    %52 = vector.shape_cast %51 : vector<1x1xf32> to vector<1x1xf32>
    %53 = vector.broadcast %52 : vector<1x1xf32> to vector<8x128xf32>
    %c0_25 = arith.constant 0 : index
    %c0_26 = arith.constant 0 : index
    %54 = vector.load %arg9[%c0_25, %c0_26] : memref<8x128xf32, #tpu.memory_space<vmem>>, vector<8x128xf32>
    tpu.vector_store %arg9[%c0_25, %c0_26], %53 {strides = array<i32>} : memref<8x128xf32, #tpu.memory_space<vmem>>, vector<8x128xf32>,
    return
  }
  func.func @transform_0(%arg0: i32) -> (i32, i32) {
    %c0_i32 = arith.constant 0 : i32
    %c0_i32_0 = arith.constant 0 : i32
    return %arg0, %c0_i32 : i32, i32
  }
  func.func @transform_1(%arg0: i32) -> (i32, i32) {
    %c0_i32 = arith.constant 0 : i32
    %c0_i32_0 = arith.constant 0 : i32
    %c0_i32_1 = arith.constant 0 : i32
    return %c0_i32, %c0_i32_0 : i32, i32
  }
  func.func @transform_2(%arg0: i32) -> (i32, i32) {
    %c0_i32 = arith.constant 0 : i32
    %c0_i32_0 = arith.constant 0 : i32
    %c0_i32_1 = arith.constant 0 : i32
    return %c0_i32, %c0_i32_0 : i32, i32
  }
  func.func @transform_3(%arg0: i32) -> (i32, i32) {
    %c0_i32 = arith.constant 0 : i32
    %c0_i32_0 = arith.constant 0 : i32
    %c0_i32_1 = arith.constant 0 : i32
    return %c0_i32, %c0_i32_0 : i32, i32
  }
  func.func @transform_4(%arg0: i32) -> (i32, i32) {
    %c0_i32 = arith.constant 0 : i32
    %c0_i32_0 = arith.constant 0 : i32
    %c0_i32_1 = arith.constant 0 : i32
    return %c0_i32, %c0_i32_0 : i32, i32
  }
  func.func @transform_5(%arg0: i32) -> (i32, i32) {
    %c0_i32 = arith.constant 0 : i32
    %c0_i32_0 = arith.constant 0 : i32
    %c0_i32_1 = arith.constant 0 : i32
    return %c0_i32, %c0_i32_0 : i32, i32
  }
  func.func @transform_6(%arg0: i32) -> (i32, i32) {
    %c0_i32 = arith.constant 0 : i32
    %c0_i32_0 = arith.constant 0 : i32
    %c0_i32_1 = arith.constant 0 : i32
    return %c0_i32, %c0_i32_0 : i32, i32
  }
  func.func @transform_7(%arg0: i32) -> (i32, i32) {
    %c0_i32 = arith.constant 0 : i32
    %c0_i32_0 = arith.constant 0 : i32
    return %arg0, %c0_i32 : i32, i32
  }
  func.func @transform_8(%arg0: i32) -> (i32, i32) {
    %c0_i32 = arith.constant 0 : i32
    %c0_i32_0 = arith.constant 0 : i32
    return %arg0, %c0_i32 : i32, i32
  }
}

</mosaic_0001>

<bundles_post_ra>
// kernel: tpu_custom_call.1
= control target key start
LH: loop header
LB: loop body
LE: loop exit
PB: predicated region body
PF: predicated region fallthrough
CT: control target
= control target key end

     0   :  { %14 = vsyncpa [#allocation3], 0  ;;  %vm55_vm0 = vcmask 1044480   ;;  %v883_v3 = vmov 0   ;;  %vm51_vm1 = vcmask 80896   ;;  %v884_v10 = vmov 0.0   ;;  %s1148_s0 = inlined_call_operand.vmem [shape: s32[8,11], index: 0, kind: input, shape index: {}]   ;;  %s1149_s1 = inlined_call_operand.vmem [shape: bf16[10,270], index: 1, kind: input, shape index: {}]   ;;  %s1150_s2 = inlined_call_operand.vmem [shape: f32[1,270], index: 2, kind: input, shape index: {}]   ;;  %s1151_s3 = inlined_call_operand.vmem [shape: bf16[270,150], index: 3, kind: input, shape index: {}]   ;;  %s1152_s4 = inlined_call_operand.vmem [shape: f32[1,150], index: 4, kind: input, shape index: {}]   ;;  %s1153_s5 = inlined_call_operand.vmem [shape: bf16[150,128], index: 5, kind: input, shape index: {}]   ;;  %s1154_s6 = inlined_call_operand.vmem [shape: f32[1,128], index: 6, kind: input, shape index: {}]   ;;  %s1155_s7 = inlined_call_operand.hbm [shape: bf16[8,128], index: 7, kind: output, shape index: {0}]   ;;  %s1156_s8 = inlined_call_operand.hbm [shape: f32[8,128], index: 8, kind: output, shape index: {1}]  }
   0x1   :  { %v766_v0 = vld [vmem:[%s1149_s1 + $0x4] ss:$12 sps:$4 sm:$0x1f]   ;;  %v768_v1 = vld [vmem:[%s1149_s1] ss:$12 sps:$4 sm:$0x1f]   ;;  %97 = vmatprep.mubr.bf16.mxu1 %v883_v3 }
   0x2   :  { %v944_v2 = vld [vmem:[%s1148_s0] sm:$0xff]  ;;  %687 = vmatprep.subr.msk.bf16.mxu1 %vm55_vm0, %v766_v0  ;;  %v57_v5 = vsel %vm55_vm0, %v768_v1, 0  ;;  %v769_v6 = vld [vmem:[%s1149_s1 + $0x8] ss:$12 sps:$4 sm:$0x1f]   ;;  %vm885_vm2 = vmmov 0  }
   0x3   :  { %v32_v4 = vcvt.s32.f32 %v944_v2  ;;  %66 = vmatpush1.bf16.msra.mxu1 %v57_v5  ;;  %v770_v8 = vld [vmem:[%s1151_s3 + $0x4] ss:$8 sps:$4 sm:$0xff]   ;;  %v772_v9 = vld [vmem:[%s1151_s3] ss:$8 sps:$4 sm:$0xff]   ;;  %v63_v11 = vsel %vm55_vm0, %v769_v6, 0 }
   0x4   :  { %747 = vmatprep.subr.bf16.mxu1 %v884_v10  ;;  %v773_v12 = vld [vmem:[%s1151_s3 + $0x14] ss:$8 sps:$4 sm:$0xff]   ;;  %400 = vmatprep.subr.bf16.mxu0 %v770_v8  ;;  %v775_v13 = vld [vmem:[%s1151_s3 + $0x10] ss:$8 sps:$4 sm:$0xff]   ;;  %v776_v14 = vld [vmem:[%s1151_s3 + $0x24] ss:$8 sps:$4 sm:$0xff]  }
   0x5   :  { %v33_v7 = vpack.c.bf16 %v32_v4, %v32_v4  ;;  %401 = vmatpush1.bf16.msra.mxu0 %v772_v9  ;;  %v778_v15 = vld [vmem:[%s1151_s3 + $0x20] ss:$8 sps:$4 sm:$0xff]   ;;  %v779_v16 = vld [vmem:[%s1151_s3 + $0x34] ss:$8 sps:$4 sm:$0xff]   ;;  %v781_v17 = vld [vmem:[%s1151_s3 + $0x30] ss:$8 sps:$4 sm:$0xff]  }
   0x6   :  { %402 = vmatprep.subr.bf16.mxu0 %v773_v12  ;;  %v782_v18 = vld [vmem:[%s1151_s3 + $0x44] ss:$8 sps:$4 sm:$0xff]   ;;  %v784_v19 = vld [vmem:[%s1151_s3 + $0x40] ss:$8 sps:$4 sm:$0xff]   ;;  %v785_v20 = vld [vmem:[%s1151_s3 + $0x54] ss:$8 sps:$4 sm:$0xff]  }
   0x7   :  { %688 = vmatmul.mubr.msk.bf16.vlgmr.msra.gmra.mrb[0].mxu1 %vm51_vm1, %v33_v7  ;;  %v787_v21 = vld [vmem:[%s1151_s3 + $0x50] ss:$8 sps:$4 sm:$0xff]   ;;  %v788_v22 = vld [vmem:[%s1151_s3 + $0x64] ss:$8 sps:$4 sm:$0xff]   ;;  %v790_v23 = vld [vmem:[%s1151_s3 + $0x60] ss:$8 sps:$4 sm:$0xff]  }
   0x8   :  { %748 = vmatpush3.bf16.msra.mxu1 %v63_v11  ;;  %749 = vmatprep.mubr.msk.bf16.mxu1 %vm885_vm2, %v884_v10  ;;  %v791_v24 = vld [vmem:[%s1151_s3 + $0x74] ss:$8 sps:$4 sm:$0xff]   ;;  %v793_v25 = vld [vmem:[%s1151_s3 + $0x70] ss:$8 sps:$4 sm:$0xff]  }
   0x9   :  { %403 = vmatpush1.bf16.msra.mxu0 %v775_v13 }
   0xa   :  { %404 = vmatprep.subr.bf16.mxu0 %v776_v14 }
   0xd   :  { %405 = vmatpush1.bf16.msra.mxu0 %v778_v15 }
   0xe   :  { %406 = vmatprep.subr.bf16.mxu0 %v779_v16 }
   0xf   :  { %750 = vmatmul.mubr.msk.bf16.vlgmr.msra.gmra.mrb[4].mxu1 %vm51_vm1, %v33_v7 }
  0x10   :  { %473 = vmatprep.mubr.bf16.mxu1 %v883_v3 }
  0x11   :  { %407 = vmatpush1.bf16.msra.mxu0 %v781_v17 }
  0x12   :  { %408 = vmatprep.subr.bf16.mxu0 %v782_v18 }
  0x15   :  { %409 = vmatpush1.bf16.msra.mxu0 %v784_v19 }
  0x16   :  { %410 = vmatprep.subr.bf16.mxu0 %v785_v20 }
  0x19   :  { %411 = vmatpush1.bf16.msra.mxu0 %v787_v21 }
  0x1a   :  { %412 = vmatprep.subr.bf16.mxu0 %v788_v22 }
  0x1d   :  { %413 = vmatpush1.bf16.msra.mxu0 %v790_v23 }
  0x1e   :  { %15 = vsyncpa [#allocation5], 0  ;;  %414 = vmatprep.subr.bf16.mxu0 %v791_v24  ;;  %v794_v26 = vld [vmem:[%s1151_s3 + $0x84] ss:$8 sps:$4 sm:$0xff]   ;;  %v796_v27 = vld [vmem:[%s1151_s3 + $0x80] ss:$8 sps:$4 sm:$0xff]   ;;  %v148_v45 = vlaneseq }
  0x1f   :  { %v797_v28 = vld [vmem:[%s1151_s3 + $0x94] ss:$8 sps:$4 sm:$0xff]   ;;  %v799_v29 = vld [vmem:[%s1151_s3 + $0x90] ss:$8 sps:$4 sm:$0xff]   ;;  %v800_v30 = vld [vmem:[%s1151_s3 + $0xa4] ss:$8 sps:$4 sm:$0xff]  }
  0x20   :  { %v802_v31 = vld [vmem:[%s1151_s3 + $0xa0] ss:$8 sps:$4 sm:$0xff]   ;;  %v803_v32 = vld [vmem:[%s1151_s3 + $0xb4] ss:$8 sps:$4 sm:$0xff]   ;;  %v805_v33 = vld [vmem:[%s1151_s3 + $0xb0] ss:$8 sps:$4 sm:$0xff]  }
  0x21   :  { %415 = vmatpush1.bf16.msra.mxu0 %v793_v25  ;;  %v806_v34 = vld [vmem:[%s1151_s3 + $0xc4] ss:$8 sps:$4 sm:$0xff]   ;;  %v808_v35 = vld [vmem:[%s1151_s3 + $0xc0] ss:$8 sps:$4 sm:$0xff]   ;;  %v809_v36 = vld [vmem:[%s1151_s3 + $0xd4] ss:$8 sps:$4 sm:$0xff]  }
  0x22   :  { %416 = vmatprep.subr.bf16.mxu0 %v794_v26  ;;  %v811_v37 = vld [vmem:[%s1151_s3 + $0xd0] ss:$8 sps:$4 sm:$0xff]   ;;  %v812_v38 = vld [vmem:[%s1151_s3 + $0xe4] ss:$8 sps:$4 sm:$0xff]   ;;  %v814_v39 = vld [vmem:[%s1151_s3 + $0xe0] ss:$8 sps:$4 sm:$0xff]  }
  0x23   :  { %v815_v40 = vld [vmem:[%s1151_s3 + $0xf4] ss:$8 sps:$4 sm:$0xff]   ;;  %v817_v41 = vld [vmem:[%s1151_s3 + $0xf0] ss:$8 sps:$4 sm:$0xff]   ;;  %vm393_vm3 = vcmask 1046528   ;;  %v1063_v46 = vshrl.u32 %v148_v45, 7 }
  0x24   :  { %v818_v42 = vld [vmem:[%s1151_s3 + $0x104] ss:$8 sps:$4 sm:$0x7f]   ;;  %v820_v43 = vld [vmem:[%s1151_s3 + $0x100] ss:$8 sps:$4 sm:$0x7f]  }
  0x25   :  { %417 = vmatpush1.bf16.msra.mxu0 %v796_v27  ;;  %731 = vmatprep.subr.msk.bf16.mxu1 %vm393_vm3, %v818_v42  ;;  %v395_v44 = vsel %vm393_vm3, %v820_v43, 0  ;;  %v150_v47 = vsub.s32 0, %v1063_v46  ;;  %v146_v48 = vld [vmem:[%s1150_s2] sm:$0x7]  ;;  %v154_v49 = vsub.s32 1, %v1063_v46  ;;  %v158_v54 = vsub.s32 2, %v1063_v46 }
  0x26   :  { %418 = vmatprep.subr.bf16.mxu0 %v797_v28  ;;  %442 = vmatpush1.bf16.msra.mxu1 %v395_v44  ;;  %v886_v57 = vmov 1.0|1.0   ;;  %vm389_vm9 = vcmask 113664   ;;  %v821_v63 = vld [vmem:[%s1153_s5] sm:$0xff]   ;;  %v822_v4 = vld [vmem:[%s1153_s5 + $0x8] sm:$0xff]   ;;  %v823_v5 = vld [vmem:[%s1153_s5 + $0x10] sm:$0xff]  }
  0x27   :  { %575 = vmatprep.subr.bf16.mxu1 %v883_v3  ;;  %v151_v50 = vrot.slane %v146_v48, %v150_v47  ;;  %v155_v51 = vrot.slane %v146_v48, %v154_v49  ;;  %v159_v58 = vrot.slane %v146_v48, %v158_v54  ;;  %v824_v6 = vld [vmem:[%s1153_s5 + $0x18] sm:$0xff]   ;;  %v825_v7 = vld [vmem:[%s1153_s5 + $0x20] sm:$0xff]   ;;  %v826_v8 = vld [vmem:[%s1153_s5 + $0x28] sm:$0xff]   ;;  %vm571_vm10 = vcmask 1042432  }
  0x28   :  { %v827_v9 = vld [vmem:[%s1153_s5 + $0x30] sm:$0xff]   ;;  %v829_v11 = vld [vmem:[%s1153_s5 + $0x40] sm:$0xff]   ;;  %v830_v12 = vld [vmem:[%s1153_s5 + $0x48] ss:$0 sps:$4 sm:$0x77]   ;;  %vm567_vm11 = vcmask 179200  }
  0x29   :  { %419 = vmatpush1.bf16.msra.mxu0 %v799_v29  ;;  %v573_v13 = vsel %vm571_vm10, %v830_v12, 0  ;;  %v209_v14 = vld [vmem:[%s1152_s4] sm:$0x3]  ;;  %vm639_vm14 = vcmp.ge.s32.totalorder %v944_v2, 0  ;;  %vm642_vm15 = vcmask 89168  }
  0x2a   :  { %420 = vmatprep.subr.bf16.mxu0 %v800_v30  ;;  %v214_v15 = vrot.slane %v209_v14, %v150_v47  ;;  %v887_v30 = vmov 10  }
  0x2b   :  { %764 = vset.pattern.permute.xlu0 %v887_v30  ;;  %765 = vset.pattern.permute.xlu1 %v887_v30 }
  0x2d   :  { %421 = vmatpush1.bf16.msra.mxu0 %v802_v31  ;;  %v619_v31 = vand.u32 127, %v148_v45 }
  0x2e   :  { %422 = vmatprep.subr.bf16.mxu0 %v803_v32  ;;  %v733_v32 = vld [vmem:[%s1154_s6] ss:$0 sm:$0xff]  ;;  %s888_s6 = smov [#allocation2]  }
  0x2f   :  { %vm620_vm12 = vcmp.lt.s32.totalorder %v619_v31, 27  ;;  %s662_s29 = sshll.u32 %s888_s6, 4  ;;  %s663_s29 = int_to_ptr.vmem [resolvable:$true] %s662_s29 }
  0x30   :  { %s835_s30 = scalar_lea.vmem %s663_s29, 64  ;;  %p840_p1 = scmp.lt.s32.totalorder %s663_s29, %s663_s29 }
  0x31   :  { %423 = vmatpush1.bf16.msra.mxu0 %v805_v33  ;;  %p836_p0 = scmp.ne.s32.totalorder %s663_s29, %s835_s30  ;;  %p841_p2 = scmp.lt.s32.totalorder %s835_s30, %s835_s30 }
  0x32   :  { %424 = vmatprep.subr.bf16.mxu0 %v806_v34 }
  0x33   :  { %p842_p3 = por %p841_p2, %p840_p1 }
  0x35   :  { %425 = vmatpush1.bf16.msra.mxu0 %v808_v35  ;;  %p843_p4 = pnand %p842_p3, %p836_p0 }
  0x36   :  { %426 = vmatprep.subr.bf16.mxu0 %v809_v36 }
  0x39   :  { %427 = vmatpush1.bf16.msra.mxu0 %v811_v37 }
  0x3a   :  { %428 = vmatprep.subr.bf16.mxu0 %v812_v38 }
  0x3d   :  { %429 = vmatpush1.bf16.msra.mxu0 %v814_v39 }
  0x3e   :  { %430 = vmatprep.subr.bf16.mxu0 %v815_v40 }
  0x41   :  { %431 = vmatpush1.bf16.msra.mxu0 %v817_v41 }
  0xda   :  { %v99_v52 = vpop.f32.mrb[0].mxu1 }
  0xdb   :  { %vm163_vm4 = vcmp.eq.f32.partialorder %v99_v52, %v151_v50  ;;  %v101_v53 = vpop.f32.mrb[1].mxu1 }
  0xdc   :  { %vm164_vm5 = vcmp.eq.f32.partialorder %v101_v53, %v155_v51  ;;  %v103_v55 = vpop.f32.mrb[2].mxu1  ;;  %vm729_vm7 = vmpackc.low %vm163_vm4, %vm163_vm4 }
  0xdd   :  { %v104_v56 = vpop.f32.mrb[3].mxu1  ;;  %vm727_vm6 = vmpackc.low %vm164_vm5, %vm164_vm5 }
  0xde   :  { %728 = vmatprep.mubr.msk.bf16.mxu0 %vm727_vm6, %v886_v57 }
  0xdf   :  { %730 = vmatmul.mubr.msk.bf16.vlgmr.msra.gmra.mrb[0].mxu0 %vm729_vm7, %v886_v57 }
  0xe2   :  { %v140_v59 = vpop.f32.mrb[4].mxu1 }
  0xe3   :  { %vm165_vm8 = vcmp.eq.f32.partialorder %v140_v59, %v159_v58  ;;  %v751_v60 = vpop.f32.mrb[5].mxu1 }
  0xe4   :  { %v692_v61 = vsel %vm165_vm8, 1.0, %v884_v10  ;;  %v143_v62 = vpop.f32.mrb[6].mxu1  ;;  %v828_v10 = vld [vmem:[%s1153_s5 + $0x38] sm:$0xff]  }
  0xe5   :  { %v174_v0 = vpack.c.bf16 %v692_v61, %v692_v61  ;;  %v752_v1 = vpop.f32.mrb[7].mxu1 }
  0xe7   :  { %732 = vmatmul.mubr.msk.bf16.vlgmr.msra.gmra.mrb[8].mxu1 %vm389_vm9, %v174_v0 }
  0xe8   :  { %576 = vmatpush1.bf16.msra.mxu1 %v821_v63 }
  0xe9   :  { %577 = vmatprep.subr.bf16.mxu1 %v883_v3 }
  0xec   :  { %578 = vmatpush1.bf16.msra.mxu1 %v822_v4 }
  0xed   :  { %579 = vmatprep.subr.bf16.mxu1 %v883_v3 }
  0xf0   :  { %580 = vmatpush1.bf16.msra.mxu1 %v823_v5 }
  0xf1   :  { %581 = vmatprep.subr.bf16.mxu1 %v883_v3 }
  0xf4   :  { %582 = vmatpush1.bf16.msra.mxu1 %v824_v6 }
  0xf5   :  { %583 = vmatprep.subr.bf16.mxu1 %v883_v3 }
  0xf8   :  { %584 = vmatpush1.bf16.msra.mxu1 %v825_v7 }
  0xf9   :  { %585 = vmatprep.subr.bf16.mxu1 %v883_v3 }
  0xfc   :  { %586 = vmatpush1.bf16.msra.mxu1 %v826_v8 }
  0xfd   :  { %587 = vmatprep.subr.bf16.mxu1 %v883_v3 }
 0x100   :  { %588 = vmatpush1.bf16.msra.mxu1 %v827_v9 }
 0x101   :  { %589 = vmatprep.subr.bf16.mxu1 %v883_v3 }
 0x104   :  { %590 = vmatpush1.bf16.msra.mxu1 %v828_v10 }
 0x105   :  { %591 = vmatprep.subr.bf16.mxu1 %v883_v3 }
 0x108   :  { %592 = vmatpush1.bf16.msra.mxu1 %v829_v11 }
 0x109   :  { %593 = vmatprep.subr.bf16.mxu1 %v883_v3  ;;  %v218_v3 = vrot.slane %v209_v14, %v154_v49 }
 0x10c   :  { %594 = vmatpush1.bf16.msra.mxu1 %v573_v13 }
 0x1b2   :  { %v434_v16 = vpop.f32.mrb[0].mxu0 }
 0x1b3   :  { %v435_v17 = vadd.f32 %v434_v16, %v214_v15  ;;  %v436_v18 = vpop.f32.mrb[1].mxu0 }
 0x1b4   :  { %v438_v19 = vpop.f32.mrb[2].mxu0  ;;  %v437_v21 = vadd.f32 %v436_v18, %v218_v3 }
 0x1b5   :  { %v439_v20 = vpop.f32.mrb[3].mxu0 }
 0x1ba   :  { %v475_v22 = vpop.f32.mrb[8].mxu1 }
 0x1bb   :  { %v476_v23 = vadd.f32 %v475_v22, %v435_v17  ;;  %v477_v24 = vpop.f32.mrb[9].mxu1 }
 0x1bc   :  { %v478_v25 = vadd.f32 %v477_v24, %v437_v21  ;;  %v479_v26 = vpop.f32.mrb[10].mxu1 }
 0x1bd   :  { %v480_v27 = vpop.f32.mrb[11].mxu1  ;;  %v482_v29 = vpack.c.bf16 %v476_v23, %v476_v23 }
 0x1be   :  { %v483_v28 = vpack.c.bf16 %v478_v25, %v478_v25 }
 0x1c0   :  { %744 = vmatprep.mubr.msk.bf16.mxu1 %vm567_vm11, %v483_v28 }
 0x1c1   :  { %608 = vmatmul.mubr.bf16.vlgmr.msra.gmra.mrb[12].mxu1 %v482_v29 }
 0x294   :  { %v609_v33 = vpop.f32.mrb[12].mxu1 }
 0x295   :  { %v610_v34 = vadd.f32 %v733_v32, %v609_v33  ;;  %v611_v35 = vpop.f32.mrb[13].mxu1 }
 0x296   :  { %v612_v36 = vpop.f32.mrb[14].mxu1 }
 0x297   :  { %v613_v37 = vpop.f32.mrb[15].mxu1  ;;  %v621_v38 = vsel %vm620_vm12, %v610_v34, -1e+30  ;;  %v615_v39 = vpack.c.bf16 %v610_v34, %v610_v34 }
 0x298   :  { %622 = vmax.xlane.f32.xlu0 %v621_v38 }
 0x299   :  { %616 = vst [vmem:[#allocation2] sm:$0xf] %v615_v39 }
 0x2ae   :  { %633 = vperm.xlu0 %764, %v944_v2  }
 0x325   :  { %v623_v40 = vpop.xlane.xlu0 %622 }
 0x326   :  { %v624_v41 = vsub.f32 %v621_v38, %v623_v40 }
 0x328   :  { %v625_v42 = vmul.f32 1.442695, %v624_v41 }
 0x32a   :  { %831 = vpow2.f32 %v625_v42 }
 0x32d   :  { %v634_v43 = vpop.permute.xlu0 %633 }
 0x32e   :  { %vm635_vm13 = vcmp.eq.s32.totalorder %v619_v31, %v634_v43 }
 0x32f   :  { %v636_v45 = vsel %vm635_vm13, %v621_v38, 0.0 }
 0x334   :  { %v832_v44 = vpop.eup %831 }
 0x335   :  { %627 = vadd.xlane.f32.xlu1 %v832_v44 }
 0x339   :  { %637 = vadd.xlane.f32.xlu1 %v636_v45 }
 0x3c2   :  { %v628_v46 = vpop.xlane.xlu1 %627 }
 0x3c3   :  { %833 = vlog2.f32 %v628_v46 }
 0x3c6   :  { %v638_v50 = vpop.xlane.xlu1 %637 }
 0x3cd   :  { %v834_v47 = vpop.eup %833 }
 0x3ce   :  { %v630_v48 = vmul.f32 0.6931472, %v834_v47 }
 0x3d0   :  { %v631_v49 = vadd.f32 %v630_v48, %v623_v40 }
 0x3d2   :  { %v640_v51 = vsub.f32 %v631_v49, %v638_v50 }
 0x3d4   :  { %v641_v52 = vsel %vm639_vm14, %v640_v51, 0.0 }
 0x3d5   :  { %v643_v53 = vsel %vm642_vm15, %v641_v52, 0.0 }
 0x3d6   :  { %v644_v54 = vrot.slane %v643_v53, 4 }
 0x3d8   :  { %v645_v55 = vadd.f32 %v644_v54, %v643_v53 }
 0x3da   :  { %v646_v56 = vrot.slane %v645_v55, 2 }
 0x3dc   :  { %v647_v57 = vadd.f32 %v646_v56, %v645_v55 }
 0x3de   :  { %v648_v58 = vrot.slane %v647_v57, 1 }
 0x3e0   :  { %v649_v59 = vadd.f32 %v648_v58, %v647_v57 }
 0x3e2   :  { %652 = vperm.xlu1 %765, %v649_v59  }
 0x3e3   :  { %846 = shalt.err (!%p843_p4)
}
 0x3e4   :  { %s847_s2 = scalar_lea.hbm %s1155_s7, 64 }
 0x3e5   :  { %p848_p5 = scmp.ne.s32.totalorder %s1155_s7, %s847_s2  ;;  %p851_p6 = scmp.lt.u32.totalorder %s847_s2, %s1155_s7 }
 0x3e7   :  { %p853_p7 = pnand %p851_p6, %p848_p5 }
 0x3e9   :  { %856 = shalt.err (!%p853_p7)
}
 0x3ea   :  { %665 = dma.vmem_to_hbm [thread:$0]  %s663_s29, 64, %s1155_s7, [#allocation3]  }
 0x3eb   :  { %s889_s15 = smov [#allocation4]  }
 0x3ec   :  { %s672_s16 = sshll.u32 %s889_s15, 4  ;;  %s673_s16 = int_to_ptr.vmem [resolvable:$true] %s672_s16 }
 0x3ed   :  { %s857_s17 = scalar_lea.vmem %s673_s16, 128  ;;  %p862_p9 = scmp.lt.s32.totalorder %s673_s16, %s673_s16 }
 0x3ee   :  { %p858_p8 = scmp.ne.s32.totalorder %s673_s16, %s857_s17  ;;  %p863_p10 = scmp.lt.s32.totalorder %s857_s17, %s857_s17 }
 0x3f0   :  { %p864_p11 = por %p863_p10, %p862_p9 }
 0x3f2   :  { %p865_p12 = pnand %p864_p11, %p858_p8 }
 0x461   :  { %v653_v2 = vpop.permute.xlu1 %652 }
 0x462   :  { %655 = vst [vmem:[#allocation4] sm:$0xff] %v653_v2 }
 0x463   :  { %868 = shalt.err (!%p865_p12)
}
 0x464   :  { %s869_s19 = scalar_lea.hbm %s1156_s8, 128 }
 0x465   :  { %p870_p13 = scmp.ne.s32.totalorder %s1156_s8, %s869_s19  ;;  %p873_p0 = scmp.lt.u32.totalorder %s869_s19, %s1156_s8 }
 0x467   :  { %p875_p1 = pnand %p873_p0, %p870_p13 }
 0x469   :  { %878 = shalt.err (!%p875_p1)
}
 0x46a   :  { %675 = dma.vmem_to_hbm [thread:$0]  %s673_s16, 128, %s1156_s8, [#allocation5]  }
 0x46b   :  { %879 = dma.done.wait [#allocation3], 64  }
 0x46c   :  { %880 = vsyncadd [#allocation3], 4294967232 }
 0x46d   :  { %881 = dma.done.wait [#allocation5], 128  }
 0x46e   :  { %882 = vsyncadd [#allocation5], 4294967168 }
 0x46f   :  { %682 = vsyncpa [#allocation3], 1 }
 0x470   :  { %683 = vsyncpa [#allocation5], 1 }

</bundles_post_ra>
